<compile_context>
chip_gen: v5e
topology: v5e:2x2
jax: 0.10.0
libtpu: 0.0.40
codegen_flags: <defaults>
</compile_context>

<pallas_src>
import functools

import jax
import jax.numpy as jnp
from jax.experimental import pallas as pl
from jax.experimental.pallas import tpu as pltpu


def _l2norm_kernel(v_ref, o_ref, *, alpha):
    v32 = v_ref[...].astype(jnp.float32)                      # accumulate in f32
    norm_sq = jnp.sum(v32 * v32, axis=1, keepdims=True) + 1e-5
    # rsqrt runs on the EUP (separate bundle slot); fold alpha into the
    # (tile_n, 1) per-row scale so the full-width op is one broadcast multiply.
    scale = jax.lax.rsqrt(norm_sq) * alpha
    o_ref[...] = (v32 * scale).astype(o_ref.dtype)


def _choose_tile_n(N, D, itemsize):
    """Biggest row tile that (a) respects sublane packing, (b) keeps the
    double-buffered in+out footprint well under the per-core VMEM budget
    (v7x has only 64 MiB/TC), and (c) leaves >= 2 grid steps when possible."""
    # Sublane packing minimum: 8 rows (f32), 16 (bf16), 32 (int8/fp8).
    row_align = max(8, 32 // max(1, itemsize))
    if N <= row_align:
        return N
    # Per single-tile budget; total footprint ~ 4-6x this (2 bufs in + 2 out + f32 temps).
    per_buffer_budget = 6 * 1024 * 1024
    tile_n = per_buffer_budget // max(1, D * itemsize)
    tile_n = max(row_align, (tile_n // row_align) * row_align)
    # Keep at least 2 grid steps so v7x's two TensorCores both get work.
    half = -(-N // 2)
    half = -(-half // row_align) * row_align
    tile_n = min(tile_n, half)
    # Never exceed the row-aligned array extent.
    n_ceil = -(-N // row_align) * row_align
    return max(row_align, min(tile_n, n_ceil))


def l2_normalization(v, alpha=1.0, *, tile_n=None):
    """Pallas equivalent of L2Normalization.forward for 2-D input v of shape (N, D)."""
    N, D = v.shape
    itemsize = jnp.dtype(v.dtype).itemsize
    if tile_n is None:
        tile_n = _choose_tile_n(N, D, itemsize)
    grid = (pl.cdiv(N, tile_n),)

    # Scoped VMEM: 2 double-buffered input tiles + 2 output tiles + f32 temps,
    # capped at 48 MiB so it stays safe on v7x (64 MiB physical per TC).
    tile_bytes = tile_n * D * itemsize
    vmem_limit = int(min(max(8 * tile_bytes, 32 * 1024 * 1024), 48 * 1024 * 1024))

    # TODO(synk): if D is far from a multiple of 128, pad the lane dim in the
    # wrapper for fully unmasked stores; full-D blocks are still correct as-is.
    kernel = functools.partial(_l2norm_kernel, alpha=float(alpha))
    return pl.pallas_call(
        kernel,
        out_shape=jax.ShapeDtypeStruct((N, D), v.dtype),
        grid_spec=pltpu.PrefetchScalarGridSpec(
            num_scalar_prefetch=0,
            grid=grid,
            in_specs=[pl.BlockSpec((tile_n, D), lambda i: (i, 0))],
            out_specs=pl.BlockSpec((tile_n, D), lambda i: (i, 0)),
        ),
        compiler_params=pltpu.CompilerParams(
            dimension_semantics=("parallel",),
            vmem_limit_bytes=vmem_limit,
        ),
    )(v)


if __name__ == "__main__":
    key = jax.random.PRNGKey(0)
    alpha = 1.5  # exercises the scale path; module default is 1.0

    def ref_fn(x, a):
        x32 = x.astype(jnp.float32)
        norm = jnp.sqrt(jnp.sum(x32 * x32, axis=1, keepdims=True) + 1e-5)
        return ((x32 / norm) * a).astype(x.dtype)

    # Small shapes: one aligned case, one with a partial last row-block and a
    # non-128 lane width (exercises the cdiv grid path + masked stores).
    for (N, D, dtype, tol) in [
        (48, 128, jnp.float32, 1e-5),
        (50, 96, jnp.float32, 1e-5),
        (64, 128, jnp.bfloat16, 2e-2),
    ]:
        key, sub = jax.random.split(key)
        v = jax.random.normal(sub, (N, D), dtype=jnp.float32).astype(dtype)
        out = jax.block_until_ready(l2_normalization(v, alpha=alpha))
        ref = ref_fn(v, alpha)
        assert out.shape == v.shape and out.dtype == v.dtype
        # rsqrt path differs from sqrt+div at the last-ulp level.
        assert jnp.allclose(out.astype(jnp.float32), ref.astype(jnp.float32),
                            atol=tol, rtol=tol), (N, D, dtype)

    print("KERNEL_OK")
</pallas_src>

<mosaic_0001>
module attributes {stable_mosaic.version = 11 : i64} {
  func.func @_l2norm_kernel(%arg0: i32, %arg1: memref<24x128xf32, #tpu.memory_space<vmem>>, %arg2: memref<24x128xf32, #tpu.memory_space<vmem>>) attributes {dimension_semantics = [#tpu.dimension_semantics<parallel>], iteration_bounds = array<i64: 2>, scalar_prefetch = 0 : i64, scratch_operands = 0 : i64, tpu.core_type = #tpu.core_type<tc>, window_params = [{transform_indices = @transform_0, window_bounds = array<i64: 24, 128>}, {transform_indices = @transform_1, window_bounds = array<i64: 24, 128>}]} {
    %c0 = arith.constant 0 : index
    %c0_0 = arith.constant 0 : index
    %0 = vector.load %arg1[%c0, %c0_0] : memref<24x128xf32, #tpu.memory_space<vmem>>, vector<24x128xf32>
    %1 = arith.mulf %0, %0 : vector<24x128xf32>
    %cst = arith.constant dense<0.000000e+00> : vector<24xf32>
    %2 = vector.multi_reduction <add>, %1, %cst [1] : vector<24x128xf32> to vector<24xf32>
    %3 = vector.shape_cast %2 : vector<24xf32> to vector<24x1xf32>
    %cst_1 = arith.constant 9.99999974E-6 : f32
    %4 = vector.broadcast %cst_1 : f32 to vector<24x1xf32>
    %5 = arith.addf %3, %4 : vector<24x1xf32>
    %6 = math.rsqrt %5 : vector<24x1xf32>
    %cst_2 = arith.constant 1.500000e+00 : f32
    %7 = vector.broadcast %cst_2 : f32 to vector<24x1xf32>
    %8 = arith.mulf %6, %7 : vector<24x1xf32>
    %9 = vector.broadcast %8 : vector<24x1xf32> to vector<24x128xf32>
    %10 = arith.mulf %0, %9 : vector<24x128xf32>
    %c0_3 = arith.constant 0 : index
    %c0_4 = arith.constant 0 : index
    %11 = vector.load %arg2[%c0_3, %c0_4] : memref<24x128xf32, #tpu.memory_space<vmem>>, vector<24x128xf32>
    tpu.vector_store %arg2[%c0_3, %c0_4], %10 {strides = array<i32>} : memref<24x128xf32, #tpu.memory_space<vmem>>, vector<24x128xf32>,
    return
  }
  func.func @transform_0(%arg0: i32) -> (i32, i32) {
    %c0_i32 = arith.constant 0 : i32
    %c0_i32_0 = arith.constant 0 : i32
    return %arg0, %c0_i32 : i32, i32
  }
  func.func @transform_1(%arg0: i32) -> (i32, i32) {
    %c0_i32 = arith.constant 0 : i32
    %c0_i32_0 = arith.constant 0 : i32
    return %arg0, %c0_i32 : i32, i32
  }
}

</mosaic_0001>

<bundles_post_ra>
// kernel: tpu_custom_call.1
= control target key start
LH: loop header
LB: loop body
LE: loop exit
PB: predicated region body
PF: predicated region fallthrough
CT: control target
= control target key end

     0   :  { %6 = vsyncpa [#allocation3], 0  ;;  %s583_s0 = inlined_call_operand.hbm [shape: f32[48,128], index: 0, kind: input, shape index: {}]   ;;  %s584_s1 = inlined_call_operand.hbm [shape: f32[48,128], index: 1, kind: output, shape index: {}]  }
   0x1   :  { %8 = vsyncpa [#allocation3 + $0x1], 0 }
   0x2   :  { %9 = vsyncpa [#allocation4], 0 }
   0x3   :  { %11 = vsyncpa [#allocation4 + $0x1], 0  ;;  %s462_s6 = smov 0   ;;  %s464_s7 = smov 0  }
   0x4   :  { %s466_s8 = smov 0   ;;  %s468_s9 = smov 0  }
   0x5 LB: > { %s483_s10 = sadd.s32 4294967295, %s446_s9   ;;  %s282_s11 = sadd.s32 4294967294, %s446_s9   ;;  %s446_s9 = sphi %s468_s9, %s592_s9   ;;  %s442_s8 = sphi %s466_s8, %s591_s8   ;;  %s438_s7 = sphi %s464_s7, %s590_s7   ;;  %s434_s6 = sphi %s462_s6, %s589_s6  }
   0x6   : > { %s487_s12 = sadd.s32 1, %s446_s9   ;;  %s24_s13 = sadd.s32 1, %s442_s8 }
   0x7   : > { %s21_s14 = ssub.s32 %s446_s9, %s487_s12  ;;  %p31_p0 = scmp.ne.s32.totalorder %s442_s8, %s438_s7 }
   0x8   : > { %p22_p1 = scmp.eq.s32.totalorder %s21_s14, 0  ;;  %p32_p2 = scmp.eq.s32.totalorder %s446_s9, 0 }
   0x9   : > { %p37_p3 = scmp.ne.s32.totalorder %s438_s7, %s434_s6  ;;  %p38_p4 = scmp.eq.s32.totalorder %s483_s10, 0 }
   0xa   : > { %s499_s15 = scalar_select %p22_p1, %s442_s8, %s24_s13  }
   0xb   : > { %p33_p5 = por %p32_p2, %p31_p0  ;;  %p501_p6 = por %p38_p4, %p37_p3 }
   0xc   : > { %p61_p7 = scmp.eq.s32.totalorder %s483_s10, 1  ;;  %p67_p8 = scmp.eq.s32.totalorder %s282_s11, 1 }
   0xd   : > { %p284_p9 = scmp.ge.s32.totalorder %s446_s9, 2  ;;  %p306_p10 = scmp.lt.s32.totalorder %s446_s9, 2 }
   0xe   : > { %p508_p11 = por %p61_p7, %p31_p0  ;;  %p512_p12 = por %p67_p8, %p37_p3 }
   0xf   : > { %s87_s19 = sand.u32 1, %s442_s8   ;;  %s290_s20 = smul.u32 24, %s446_s9 }
  0x10   : > { %s292_s21 = smul.u32 24, %s87_s19  ;;  %p521_p13 = pnand %p306_p10, %p33_p5 }
  0x11   : > { %s96_s24 = scalar_lea.hbm %s583_s0, %s290_s20  ;;  %s88_s29 = scalar_lea.sflag [#allocation3], %s87_s19 }
  0x12   : > { %s97_s26 = sshll.u32 %s96_s24, 4  ;;  %s91_s27 = scalar_lea.vmem [#allocation2], %s292_s21  ;;  %s98_s26 = int_to_ptr.hbm [resolvable:$true] %s97_s26 }
  0x13   : > { %s99_s28 = sshll.u32 %s91_s27, 4  ;;  %s350_s30 = sshra.s32 %s98_s26, 4  ;;  %s100_s28 = int_to_ptr.vmem [resolvable:$true] %s99_s28  ;;  %s351_s30 = int_to_ptr.hbm [resolvable:$true] %s350_s30 }
  0x14   : > { %s352_s2 = scalar_lea.hbm %s351_s30, 24  ;;  %p354_p1 = pneg %p521_p13 }
  0x15   : > { %p353_p0 = scmp.ne.s32.totalorder %s351_s30, %s352_s2  ;;  %s357_s5 = scalar_lea.hbm %s583_s0, 48 }
  0x16   : > { %p358_p4 = scmp.lt.s32.totalorder %s351_s30, %s583_s0  ;;  %p359_p5 = scmp.lt.s32.totalorder %s357_s5, %s352_s2 }
  0x17   : > { %p355_p2 = pnand %p354_p1, %p353_p0 }
  0x18   : > { %p360_p7 = por %p359_p5, %p358_p4 }
  0x19   : > { %p356_p3 = pneg %p355_p2 }
  0x1b   : > { %p361_p8 = pnand %p360_p7, %p356_p3 }
  0x1d   : > { %364 = shalt.err (!%p361_p8)
}
  0x1e   : > { %s448_s14 = smov 128   ;;  %s449_s19 = smov 8  }
  0x1f   : > { %301 = dma.hbm_to_vmem [thread:$0]  (!%p521_p13), %s98_s26, 384, %s100_s28, %s88_s29, %s448_s14, %s448_s14, %s449_s19  }
  0x20   : > { %p286_p10 = scmp.ge.s32.totalorder %s446_s9, 1  ;;  %p107_p0 = scmp.lt.s32.totalorder %s446_s9, 3 }
  0x22   : > { %p108_p1 = pnand %p286_p10, %p107_p0 }
  0x23   : > { %s538_s20 = sand.u32 (!%p108_p1), 1, %s438_s7  }
  0x24   : > { %111 = sbr.rel (%p108_p1) target bundleno = 197 (0xc5), region = 24  ;;  %s114_s22 = scalar_lea.sflag (!%p108_p1), [#allocation3], %s538_s20 }
  0x25   : > { %s293_s21 = smul.u32 (!%p108_p1), 24, %s538_s20 }
  0x27   : > { %s117_s23 = scalar_lea.vmem (!%p108_p1), [#allocation2], %s293_s21 }
  0x29   : > { %425 = dma.done.wait (%p501_p6), %s114_s22, 384  }
  0x2a   : > { %427 = vsyncadd (%p501_p6), %s114_s22, 4294966912  ;;  %v141_v0 = vld [vmem:[%s117_s23 + $0x10] sm:$0xff]  ;;  %v139_v1 = vld [vmem:[%s117_s23] sm:$0xff]  ;;  %s291_s16 = smul.u32 24, %s483_s10  ;;  %s136_s27 = scalar_lea.vmem [#allocation5], %s293_s21 }
  0x2b   : > { %v144_v2 = vmul.f32 %v141_v0, %v141_v0  ;;  %v142_v3 = vmul.f32 %v139_v1, %v139_v1  ;;  %v140_v4 = vld [vmem:[%s117_s23 + $0x8] sm:$0xff]  ;;  %s206_s10 = sshll.u32 %s136_s27, 4  ;;  %s194_s29 = scalar_lea.sflag [#allocation4], %s538_s20  ;;  %s207_s10 = int_to_ptr.vmem [resolvable:$true] %s206_s10 }
  0x2c   : > { %v143_v5 = vmul.f32 %v140_v4, %v140_v4  ;;  %s205_s26 = scalar_lea.hbm %s584_s1, %s291_s16  ;;  %s400_s5 = scalar_lea.hbm %s584_s1, 48 }
  0x2d   : > { %149 = vadd.xlane.f32.xlu1 %v144_v2  ;;  %145 = vadd.xlane.f32.xlu0 %v142_v3  ;;  %s208_s28 = sshll.u32 %s205_s26, 4  ;;  %s209_s28 = int_to_ptr.hbm [resolvable:$true] %s208_s28 }
  0x2e   : > { %s394_s30 = sshra.s32 %s209_s28, 4  ;;  %s395_s30 = int_to_ptr.hbm [resolvable:$true] %s394_s30 }
  0x2f   : > { %s396_s2 = scalar_lea.hbm %s395_s30, 24  ;;  %p401_p3 = scmp.lt.s32.totalorder %s395_s30, %s584_s1 }
  0x30   : > { %p397_p6 = scmp.ne.s32.totalorder %s395_s30, %s396_s2  ;;  %p402_p4 = scmp.lt.s32.totalorder %s400_s5, %s396_s2 }
  0x32   : > { %p398_p13 = pnand %p397_p6, %p508_p11  ;;  %p403_p5 = por %p402_p4, %p401_p3 }
  0x34   : > { %p399_p2 = pneg %p398_p13 }
  0x35   : > { %147 = vadd.xlane.f32.xlu0 %v143_v5 }
  0x36   : > { %p404_p7 = pnand %p403_p5, %p399_p2 }
  0xa0   : > { %v150_v6 = vpop.xlane.xlu1 %149  ;;  %v146_v7 = vpop.xlane.xlu0 %145 }
  0xa1   : > { %v153_v8 = vadd.f32 1e-05, %v150_v6  ;;  %v151_v9 = vadd.f32 1e-05, %v146_v7 }
  0xa3   : > { %344 = vrsqrt.f32 %v153_v8  ;;  %vm180_vm0 = vweird.f32 %v153_v8  ;;  %vm160_vm4 = vweird.f32 %v151_v9 }
  0xa4   : > { %346 = vrsqrt.f32 %v151_v9 }
  0xa8   : > { %v148_v10 = vpop.xlane.xlu0 %147 }
  0xa9   : > { %v345_v11 = vpop.eup %344  ;;  %v152_v12 = vadd.f32 1e-05, %v148_v10 }
  0xaa   : > { %v347_v13 = vpop.eup %346  ;;  %v175_v14 = vmul.f32 %v345_v11, %v153_v8  ;;  %vm181_vm1 = vweird.f32 %v345_v11 }
  0xab   : > { %v155_v15 = vmul.f32 %v347_v13, %v151_v9  ;;  %348 = vrsqrt.f32 %v152_v12  ;;  %vm161_vm2 = vweird.f32 %v347_v13  ;;  %vm182_vm3 = vmor %vm180_vm0, %vm181_vm1  ;;  %vm170_vm7 = vweird.f32 %v152_v12 }
  0xac   : > { %v176_v16 = vmul.f32 %v345_v11, %v175_v14  ;;  %vm162_vm5 = vmor %vm160_vm4, %vm161_vm2 }
  0xad   : > { %v156_v17 = vmul.f32 %v347_v13, %v155_v15 }
  0xae   : > { %v177_v18 = vmul.f32 0.5, %v176_v16 }
  0xaf   : > { %v157_v19 = vmul.f32 0.5, %v156_v17 }
  0xb0   : > { %v178_v20 = vsub.f32 1.5, %v177_v18 }
  0xb1   : > { %v349_v21 = vpop.eup %348  ;;  %v158_v22 = vsub.f32 1.5, %v157_v19 }
  0xb2   : > { %v179_v23 = vmul.f32 %v345_v11, %v178_v20  ;;  %v165_v24 = vmul.f32 %v349_v21, %v152_v12  ;;  %vm171_vm6 = vweird.f32 %v349_v21 }
  0xb3   : > { %v159_v25 = vmul.f32 %v347_v13, %v158_v22  ;;  %vm172_vm8 = vmor %vm170_vm7, %vm171_vm6 }
  0xb4   : > { %v183_v26 = vsel %vm182_vm3, %v345_v11, %v179_v23  ;;  %v166_v27 = vmul.f32 %v349_v21, %v165_v24 }
  0xb5   : > { %v186_v28 = vmul.f32 1.5, %v183_v26  ;;  %v163_v29 = vsel %vm162_vm5, %v347_v13, %v159_v25 }
  0xb6   : > { %v184_v30 = vmul.f32 1.5, %v163_v29  ;;  %v167_v31 = vmul.f32 0.5, %v166_v27 }
  0xb7   : > { %v189_v32 = vmul.f32 %v186_v28, %v141_v0 }
  0xb8   : > { %v187_v33 = vmul.f32 %v184_v30, %v139_v1  ;;  %v168_v34 = vsub.f32 1.5, %v167_v31 }
  0xb9   : > { %192 = vst [vmem:[%s136_s27 + $0x10] sm:$0xff] %v189_v32 }
  0xba   : > { %190 = vst [vmem:[%s136_s27] sm:$0xff] %v187_v33  ;;  %v169_v35 = vmul.f32 %v349_v21, %v168_v34 }
  0xbc   : > { %v173_v36 = vsel %vm172_vm8, %v349_v21, %v169_v35 }
  0xbd   : > { %v185_v37 = vmul.f32 1.5, %v173_v36 }
  0xbf   : > { %v188_v38 = vmul.f32 %v185_v37, %v140_v4 }
  0xc1   : > { %191 = vst [vmem:[%s136_s27 + $0x8] sm:$0xff] %v188_v38 }
  0xc2   : > { %407 = shalt.err (!%p404_p7)
}
  0xc3   : > { %s450_s14 = smov 128   ;;  %s451_s19 = smov 8  }
  0xc4   : > { %296 = dma.vmem_to_hbm [thread:$0]  (%p508_p11), %s207_s10, 384, %s209_s28, %s194_s29, %s450_s14, %s450_s14, %s451_s19  }
  0xc5 PF: > { %s223_s20 = sand.u32 1, %s434_s6   ;;  %p303_p8 = pnand %p284_p9, %p512_p12 }
  0xc6   : > { %s224_s21 = scalar_lea.sflag [#allocation4], %s223_s20 }
  0xc7   : > { %p304_p10 = pneg %p303_p8 }
  0xc9   : > { %429 = dma.done.wait (%p304_p10), %s224_s21, 384  }
  0xca   : > { %431 = vsyncadd (%p304_p10), %s224_s21, 4294966912  ;;  %p14_p0 = scmp.ge.s32.totalorder %s487_s12, 4   ;;  %s589_s6 = smov %s438_s7 }
  0xcb   : > { %s590_s7 = smov %s442_s8  ;;  %s591_s8 = smov %s499_s15 }
  0xcc   : > { %s592_s9 = smov %s487_s12  ;;  %16 = sbr.rel (!%p14_p0) target bundleno = 5 (0x5), region = 69 }
  0xd1   :  { %230 = vsyncpa [#allocation3], 1 }
  0xd2   :  { %232 = vsyncpa [#allocation3 + $0x1], 1 }
  0xd3   :  { %233 = vsyncpa [#allocation4], 1 }
  0xd4   :  { %235 = vsyncpa [#allocation4 + $0x1], 1 }

</bundles_post_ra>
